<compile_context>
chip_gen: v5e
topology: v5e:2x2
jax: 0.10.0
libtpu: 0.0.40
codegen_flags: <defaults>
</compile_context>

<pallas_src>
import functools

import jax
import jax.numpy as jnp
from jax.experimental import pallas as pl
from jax.experimental.pallas import tpu as pltpu

LANE = 128          # TPU lane width: internal feature dims padded to this
NEG_BIAS = -1e30    # padded output logits -> exp() == 0, softmax unaffected (f32 only!)


def simple_nn_kernel(x_ref, w1_ref, b1_ref, w2_ref, b2_ref, out_ref):
    # ---- fc1: cast x -> bf16 in-kernel (no extra HBM pass), MXU matmul, f32 acc ----
    x = x_ref[...].astype(jnp.bfloat16)
    h = jnp.dot(x, w1_ref[...], preferred_element_type=jnp.float32)
    h = jnp.maximum(h + b1_ref[...], 0.0)          # b1 is (1, Hp): sublane broadcast

    # ---- fc2: activations back to bf16 for the MXU's native bf16 rate ----
    logits = jnp.dot(h.astype(w2_ref.dtype), w2_ref[...],
                     preferred_element_type=jnp.float32)
    logits = logits + b2_ref[...]                  # padded cols get -1e30 -> exp == 0

    # ---- numerically-stable softmax over the lane (feature) axis, f32 epilogue ----
    m = jnp.max(logits, axis=-1, keepdims=True)
    e = jnp.exp(logits - m)
    denom = jnp.sum(e, axis=-1, keepdims=True)
    # approx reciprocal lowers to the otherwise-idle EUP slot (off the VALU path)
    probs = e * pl.reciprocal(denom, approx=True)

    # store ONLY the real output columns: un-padded writeback (~64x fewer bytes)
    out_ref[...] = probs[:, : out_ref.shape[-1]].astype(out_ref.dtype)


def pad_params(w1, b1, w2, b2):
    """Pad hidden/output dims up to 128 lanes; cast matmul operands to bf16.

    Padded hidden columns: zero weights + zero bias  -> ReLU(0) = 0, contribute nothing.
    Padded output columns: zero weights + NEG_BIAS   -> softmax weight exactly 0.
    Biases stay f32 (whole epilogue is f32).  Call once and reuse across forwards."""
    in_f, hid = w1.shape
    _, out_f = w2.shape
    hp = max(LANE, pl.cdiv(hid, LANE) * LANE)
    op = max(LANE, pl.cdiv(out_f, LANE) * LANE)
    w1p = jnp.zeros((in_f, hp), jnp.float32).at[:, :hid].set(w1).astype(jnp.bfloat16)
    b1p = jnp.zeros((1, hp), jnp.float32).at[:, :hid].set(b1.reshape(1, hid))
    w2p = jnp.zeros((hp, op), jnp.float32).at[:hid, :out_f].set(w2).astype(jnp.bfloat16)
    b2p = jnp.full((1, op), NEG_BIAS, jnp.float32).at[:, :out_f].set(b2.reshape(1, out_f))
    return w1p, b1p, w2p, b2p


def pick_batch_tile(batch):
    """Batch tile: multiple of 8, large enough to amortize per-grid-step overhead and
    fill the v6e/v7x MXU M dim (>=256 when batch allows), but capped so there are
    always >= 2 grid steps for v7x's two TensorCores whenever the batch permits."""
    b8 = max(8, pl.cdiv(batch, 8) * 8)
    if b8 <= 16:
        return b8                         # tiny batch: single step is all we can do
    half = max(8, (b8 // 2) // 8 * 8)     # two-way split keeps both v7x TCs busy
    return min(512, half)                 # 512-row cap: ~85% of HBM roofline territory


def simple_nn_forward(x, w1p, b1p, w2p, b2p, *, output_size):
    B, in_f = x.shape
    hp = w1p.shape[1]
    op = w2p.shape[1]

    tb = pick_batch_tile(B)
    n_blocks = pl.cdiv(B, tb)
    Bp = n_blocks * tb
    if Bp != B:                                    # pad ragged batch to a whole tile
        x = jnp.pad(x, ((0, Bp - B), (0, 0)))
    # NOTE: x stays f32 here; the bf16 cast happens inside the kernel.

    cost = pl.CostEstimate(
        flops=2 * Bp * (in_f * hp + hp * op),
        transcendentals=Bp * (op + 1),             # exp per padded logit + reciprocal/row
        bytes_accessed=(Bp * in_f * 4              # f32 x read
                        + in_f * hp * 2 + hp * 4   # bf16 w1 + f32 b1
                        + hp * op * 2 + op * 4     # bf16 w2 + f32 b2
                        + Bp * output_size * 4),   # slim f32 output write
    )

    # Deeper prefetch on x only pays off when the grid is long (exposed DMA);
    # at 2-4 steps the default double buffer already covers it.
    x_spec_kwargs = {"pipeline_mode": pl.Buffered(3)} if n_blocks > 4 else {}

    out = pl.pallas_call(
        simple_nn_kernel,
        out_shape=jax.ShapeDtypeStruct((Bp, output_size), jnp.float32),
        grid_spec=pltpu.PrefetchScalarGridSpec(
            num_scalar_prefetch=0,
            grid=(n_blocks,),
            in_specs=[
                pl.BlockSpec((tb, in_f), lambda i: (i, 0), **x_spec_kwargs),
                pl.BlockSpec((in_f, hp), lambda i: (0, 0)),   # weights stay VMEM-resident
                pl.BlockSpec((1, hp), lambda i: (0, 0)),
                pl.BlockSpec((hp, op), lambda i: (0, 0)),
                pl.BlockSpec((1, op), lambda i: (0, 0)),
            ],
            # un-padded output block: last dim equals full array dim (legal), tiny write
            out_specs=pl.BlockSpec((tb, output_size), lambda i: (i, 0)),
        ),
        compiler_params=pltpu.CompilerParams(
            dimension_semantics=("parallel",),     # shards batch grid across v7x's 2 TCs
            vmem_limit_bytes=32 * 1024 * 1024,     # safe on v5e/v6e and v7x's 64 MiB VMEM
        ),
        cost_estimate=cost,
    )(x, w1p, b1p, w2p, b2p)

    return out[:B]


def init_params(key, input_size, hidden_size, output_size):
    """Deterministic PyTorch-style (Kaiming-uniform-ish) init, stored as [in, out]."""
    k1, k2, k3, k4 = jax.random.split(key, 4)
    lim1 = 1.0 / jnp.sqrt(input_size)
    lim2 = 1.0 / jnp.sqrt(hidden_size)
    w1 = jax.random.uniform(k1, (input_size, hidden_size), jnp.float32, -lim1, lim1)
    b1 = jax.random.uniform(k2, (1, hidden_size), jnp.float32, -lim1, lim1)
    w2 = jax.random.uniform(k3, (hidden_size, output_size), jnp.float32, -lim2, lim2)
    b2 = jax.random.uniform(k4, (1, output_size), jnp.float32, -lim2, lim2)
    return w1, b1, w2, b2


if __name__ == "__main__":
    # batch=256 (2 tiles of 128 -> both v7x TensorCores busy, pipeline exercised),
    # input_size=64, hidden_size=32, output_size=2 (sentiment classes)
    B, INPUT, HIDDEN, OUTPUT = 256, 64, 32, 2

    key = jax.random.PRNGKey(0)
    kx, kp = jax.random.split(key)
    x = jax.random.normal(kx, (B, INPUT), dtype=jnp.float32)
    w1, b1, w2, b2 = init_params(kp, INPUT, HIDDEN, OUTPUT)

    # pad/cast the weights once; reuse the padded bf16 params across forward calls
    w1p, b1p, w2p, b2p = pad_params(w1, b1, w2, b2)

    forward = jax.jit(functools.partial(simple_nn_forward, output_size=OUTPUT))
    out = forward(x, w1p, b1p, w2p, b2p)
    out = jax.block_until_ready(out)

    # Reference in plain JAX with the same bf16 rounding on matmul operands so the
    # comparison isolates MXU accumulation order + approx-reciprocal error.
    xb = x.astype(jnp.bfloat16).astype(jnp.float32)
    w1b = w1.astype(jnp.bfloat16).astype(jnp.float32)
    w2b = w2.astype(jnp.bfloat16).astype(jnp.float32)
    h_ref = jnp.maximum(xb @ w1b + b1, 0.0)
    hb = h_ref.astype(jnp.bfloat16).astype(jnp.float32)
    logits_ref = hb @ w2b + b2
    ref = jax.nn.softmax(logits_ref, axis=1)

    assert out.shape == (B, OUTPUT)
    # Tolerances deliberately relaxed for bf16 matmul inputs + approx reciprocal.
    assert jnp.allclose(out, ref, atol=1e-2, rtol=1e-2), float(jnp.max(jnp.abs(out - ref)))
    assert jnp.allclose(jnp.sum(out, axis=1), 1.0, atol=1e-2)

    print("KERNEL_OK")
</pallas_src>

<mosaic_0001>
module attributes {stable_mosaic.version = 11 : i64} {
  func.func @simple_nn_kernel(%arg0: i32, %arg1: memref<128x64xf32, #tpu.memory_space<vmem>>, %arg2: memref<64x128xbf16, #tpu.memory_space<vmem>>, %arg3: memref<1x128xf32, #tpu.memory_space<vmem>>, %arg4: memref<128x128xbf16, #tpu.memory_space<vmem>>, %arg5: memref<1x128xf32, #tpu.memory_space<vmem>>, %arg6: memref<128x2xf32, #tpu.memory_space<vmem>>) attributes {dimension_semantics = [#tpu.dimension_semantics<parallel>], iteration_bounds = array<i64: 2>, scalar_prefetch = 0 : i64, scratch_operands = 0 : i64, tpu.core_type = #tpu.core_type<tc>, window_params = [{transform_indices = @transform_0, window_bounds = array<i64: 128, 64>}, {pipeline_mode = #tpu.pipeline_mode<synchronous>, transform_indices = @transform_1, window_bounds = array<i64: 64, 128>}, {pipeline_mode = #tpu.pipeline_mode<synchronous>, transform_indices = @transform_2, window_bounds = array<i64: 1, 128>}, {pipeline_mode = #tpu.pipeline_mode<synchronous>, transform_indices = @transform_3, window_bounds = array<i64: 128, 128>}, {pipeline_mode = #tpu.pipeline_mode<synchronous>, transform_indices = @transform_4, window_bounds = array<i64: 1, 128>}, {transform_indices = @transform_5, window_bounds = array<i64: 128, 2>}]} {
    %c0 = arith.constant 0 : index
    %c0_0 = arith.constant 0 : index
    %0 = vector.load %arg1[%c0, %c0_0] : memref<128x64xf32, #tpu.memory_space<vmem>>, vector<128x64xf32>
    %1 = arith.truncf %0 : vector<128x64xf32> to vector<128x64xbf16>
    %c0_1 = arith.constant 0 : index
    %c0_2 = arith.constant 0 : index
    %2 = vector.load %arg2[%c0_1, %c0_2] : memref<64x128xbf16, #tpu.memory_space<vmem>>, vector<64x128xbf16>
    %cst = arith.constant dense<0.000000e+00> : vector<128x128xf32>
    %3 = tpu.matmul %1, %2, %cst {dimension_numbers = #tpu.dot_dimension_numbers<[1], [0], [0], [1], [0, 0, 1, 1], [], []>} : vector<128x64xbf16>, vector<64x128xbf16>, vector<128x128xf32> -> vector<128x128xf32>
    %c0_3 = arith.constant 0 : index
    %c0_4 = arith.constant 0 : index
    %4 = vector.load %arg3[%c0_3, %c0_4] : memref<1x128xf32, #tpu.memory_space<vmem>>, vector<1x128xf32>
    %5 = vector.broadcast %4 : vector<1x128xf32> to vector<128x128xf32>
    %6 = arith.addf %3, %5 : vector<128x128xf32>
    %cst_5 = arith.constant 0.000000e+00 : f32
    %7 = vector.broadcast %cst_5 : f32 to vector<128x128xf32>
    %8 = arith.maximumf %6, %7 : vector<128x128xf32>
    %9 = arith.truncf %8 : vector<128x128xf32> to vector<128x128xbf16>
    %c0_6 = arith.constant 0 : index
    %c0_7 = arith.constant 0 : index
    %10 = vector.load %arg4[%c0_6, %c0_7] : memref<128x128xbf16, #tpu.memory_space<vmem>>, vector<128x128xbf16>
    %cst_8 = arith.constant dense<0.000000e+00> : vector<128x128xf32>
    %11 = tpu.matmul %9, %10, %cst_8 {dimension_numbers = #tpu.dot_dimension_numbers<[1], [0], [0], [1], [0, 0, 1, 1], [], []>} : vector<128x128xbf16>, vector<128x128xbf16>, vector<128x128xf32> -> vector<128x128xf32>
    %c0_9 = arith.constant 0 : index
    %c0_10 = arith.constant 0 : index
    %12 = vector.load %arg5[%c0_9, %c0_10] : memref<1x128xf32, #tpu.memory_space<vmem>>, vector<1x128xf32>
    %13 = vector.broadcast %12 : vector<1x128xf32> to vector<128x128xf32>
    %14 = arith.addf %11, %13 : vector<128x128xf32>
    %cst_11 = arith.constant dense<0xFF800000> : vector<128xf32>
    %15 = vector.multi_reduction <maximumf>, %14, %cst_11 [1] : vector<128x128xf32> to vector<128xf32>
    %16 = vector.shape_cast %15 : vector<128xf32> to vector<128x1xf32>
    %17 = vector.broadcast %16 : vector<128x1xf32> to vector<128x128xf32>
    %18 = arith.subf %14, %17 : vector<128x128xf32>
    %19 = math.exp %18 : vector<128x128xf32>
    %cst_12 = arith.constant dense<0.000000e+00> : vector<128xf32>
    %20 = vector.multi_reduction <add>, %19, %cst_12 [1] : vector<128x128xf32> to vector<128xf32>
    %21 = vector.shape_cast %20 : vector<128xf32> to vector<128x1xf32>
    %22 = tpu.reciprocal %21 {approx = true} : vector<128x1xf32> -> vector<128x1xf32>
    %23 = vector.broadcast %22 : vector<128x1xf32> to vector<128x128xf32>
    %24 = arith.mulf %19, %23 : vector<128x128xf32>
    %25 = vector.extract_strided_slice %24 {offsets = [0, 0], sizes = [128, 2], strides = [1, 1]} : vector<128x128xf32> to vector<128x2xf32>
    %c0_13 = arith.constant 0 : index
    %c0_14 = arith.constant 0 : index
    %26 = vector.load %arg6[%c0_13, %c0_14] : memref<128x2xf32, #tpu.memory_space<vmem>>, vector<128x2xf32>
    tpu.vector_store %arg6[%c0_13, %c0_14], %25 {strides = array<i32>} : memref<128x2xf32, #tpu.memory_space<vmem>>, vector<128x2xf32>,
    return
  }
  func.func @transform_0(%arg0: i32) -> (i32, i32) {
    %c0_i32 = arith.constant 0 : i32
    %c0_i32_0 = arith.constant 0 : i32
    return %arg0, %c0_i32 : i32, i32
  }
  func.func @transform_1(%arg0: i32) -> (i32, i32) {
    %c0_i32 = arith.constant 0 : i32
    %c0_i32_0 = arith.constant 0 : i32
    %c0_i32_1 = arith.constant 0 : i32
    return %c0_i32, %c0_i32_0 : i32, i32
  }
  func.func @transform_2(%arg0: i32) -> (i32, i32) {
    %c0_i32 = arith.constant 0 : i32
    %c0_i32_0 = arith.constant 0 : i32
    %c0_i32_1 = arith.constant 0 : i32
    return %c0_i32, %c0_i32_0 : i32, i32
  }
  func.func @transform_3(%arg0: i32) -> (i32, i32) {
    %c0_i32 = arith.constant 0 : i32
    %c0_i32_0 = arith.constant 0 : i32
    %c0_i32_1 = arith.constant 0 : i32
    return %c0_i32, %c0_i32_0 : i32, i32
  }
  func.func @transform_4(%arg0: i32) -> (i32, i32) {
    %c0_i32 = arith.constant 0 : i32
    %c0_i32_0 = arith.constant 0 : i32
    %c0_i32_1 = arith.constant 0 : i32
    return %c0_i32, %c0_i32_0 : i32, i32
  }
  func.func @transform_5(%arg0: i32) -> (i32, i32) {
    %c0_i32 = arith.constant 0 : i32
    %c0_i32_0 = arith.constant 0 : i32
    return %arg0, %c0_i32 : i32, i32
  }
}

</mosaic_0001>

<bundles_post_ra>
// kernel: simple_nn_forward.1
= control target key start
LH: loop header
LB: loop body
LE: loop exit
PB: predicated region body
PF: predicated region fallthrough
CT: control target
= control target key end

     0   :  { %s924_s18 = smov 0   ;;  %s1158_s0 = inlined_call_operand.vmem [shape: f32[256,64], index: 0, kind: input, shape index: {}]   ;;  %s1159_s1 = inlined_call_operand.vmem [shape: bf16[64,128], index: 1, kind: input, shape index: {}]   ;;  %s1160_s2 = inlined_call_operand.vmem [shape: f32[1,128], index: 2, kind: input, shape index: {}]   ;;  %s1161_s3 = inlined_call_operand.vmem [shape: bf16[128,128], index: 3, kind: input, shape index: {}]   ;;  %s1162_s4 = inlined_call_operand.vmem [shape: f32[1,128], index: 4, kind: input, shape index: {}]   ;;  %s1163_s5 = inlined_call_operand.vmem [shape: f32[256,2], index: 5, kind: output, shape index: {}]  }
   0x1 LB: > { %s721_s19 = sadd.s32 4294967295, %s892_s18   ;;  %p725_p0 = scmp.ge.s32.totalorder %s892_s18, 1  ;;  %s892_s18 = sphi %s924_s18, %s15_s18  }
   0x2   : > { %p188_p1 = scmp.lt.s32.totalorder %s892_s18, 3 }
   0x4   : > { %p189_p2 = pnand %p725_p0, %p188_p1 }
   0x5   : > { %s726_s22 = sshll.u32 (!%p189_p2), %s721_s19, 4 }
   0x6   : > { %192 = sbr.rel (%p189_p2) target bundleno = 674 (0x2a2), region = 40  ;;  %p217_p3 = scmp.lt.s32.totalorder (!%p189_p2), %s726_s22, 31 }
   0xb   : > { %v791_v0 = vld [vmem:[%s1159_s1 + $0x18] sm:$0xff]  ;;  %v790_v1 = vld [vmem:[%s1159_s1 + $0x10] sm:$0xff]  ;;  %s1165_s22 = smov (!%p217_p3, %s726_s22), 31  ;;  %v789_v2 = vld [vmem:[%s1159_s1 + $0x8] sm:$0xff]  ;;  %vm289_vm0 = vcmask 523264   ;;  %vm648_vm1 = vcmask 15360  }
   0xc   : > { %318 = vmatpush.bf16.msra.mxu0 %v791_v0  ;;  %800 = vmatpush.bf16.msra.mxu3 %v791_v0  ;;  %s727_s25 = sshll.u32 %s1165_s22, 3  ;;  %v788_v3 = vld [vmem:[%s1159_s1] sm:$0xff]  ;;  %v799_v16 = vld [vmem:[%s1161_s3 + $0x38] sm:$0xff]  ;;  %v798_v17 = vld [vmem:[%s1161_s3 + $0x30] sm:$0xff] }
   0xd   : > { %s949_s30 = scalar_lea.vmem %s1158_s0, %s727_s25  ;;  %455 = vmatpush.bf16.msra.mxu1 %v799_v16  ;;  %804 = vmatpush.bf16.msra.mxu2 %v799_v16  ;;  %v797_v18 = vld [vmem:[%s1161_s3 + $0x28] sm:$0xff]  ;;  %v796_v24 = vld [vmem:[%s1161_s3 + $0x20] sm:$0xff]  ;;  %v795_v32 = vld [vmem:[%s1161_s3 + $0x18] sm:$0xff]  ;;  %s1102_s8 = scalar_lea.vmem %s1163_s5, %s727_s25 }
   0xe   : > { %v229_v4 = vld [vmem:[%s949_s30] sm:$0xff]  ;;  %v230_v5 = vld [vmem:[%s949_s30 + $0x8] sm:$0xff]  ;;  %v231_v7 = vld [vmem:[%s949_s30 + $0x10] sm:$0xff] }
   0xf   : > { %v245_v6 = vpack.c.bf16 %v230_v5, %v229_v4  ;;  %v232_v8 = vld [vmem:[%s949_s30 + $0x18] sm:$0xff]  ;;  %v233_v10 = vld [vmem:[%s949_s30 + $0x20] sm:$0xff]  ;;  %v234_v11 = vld [vmem:[%s949_s30 + $0x28] sm:$0xff] }
  0x10   : > { %319 = vmatpush.bf16.msra.mxu0 %v790_v1  ;;  %801 = vmatpush.bf16.msra.mxu3 %v790_v1  ;;  %v246_v9 = vpack.c.bf16 %v232_v8, %v231_v7  ;;  %v247_v12 = vpack.c.bf16 %v234_v11, %v233_v10  ;;  %v239_v13 = vld [vmem:[%s949_s30 + $0x50] sm:$0xff]  ;;  %v240_v14 = vld [vmem:[%s949_s30 + $0x58] sm:$0xff]  ;;  %v241_v21 = vld [vmem:[%s949_s30 + $0x60] sm:$0xff] }
  0x11   : > { %v250_v15 = vpack.c.bf16 %v240_v14, %v239_v13  ;;  %456 = vmatpush.bf16.msra.mxu1 %v798_v17  ;;  %805 = vmatpush.bf16.msra.mxu2 %v798_v17  ;;  %v235_v19 = vld [vmem:[%s949_s30 + $0x30] sm:$0xff]  ;;  %v236_v20 = vld [vmem:[%s949_s30 + $0x38] sm:$0xff]  ;;  %v242_v22 = vld [vmem:[%s949_s30 + $0x68] sm:$0xff] }
  0x12   : > { %v248_v23 = vpack.c.bf16 %v236_v20, %v235_v19  ;;  %v251_v25 = vpack.c.bf16 %v242_v22, %v241_v21  ;;  %v237_v26 = vld [vmem:[%s949_s30 + $0x40] sm:$0xff]  ;;  %v238_v27 = vld [vmem:[%s949_s30 + $0x48] sm:$0xff]  ;;  %v243_v28 = vld [vmem:[%s949_s30 + $0x70] sm:$0xff] }
  0x13   : > { %v244_v29 = vld [vmem:[%s949_s30 + $0x78] sm:$0xff]  ;;  %v249_v30 = vpack.c.bf16 %v238_v27, %v237_v26  ;;  %v794_v33 = vld [vmem:[%s1161_s3 + $0x10] sm:$0xff]  ;;  %v793_v34 = vld [vmem:[%s1161_s3 + $0x8] sm:$0xff] }
  0x14   : > { %320 = vmatpush.bf16.msra.mxu0 %v789_v2  ;;  %802 = vmatpush.bf16.msra.mxu3 %v789_v2  ;;  %v252_v31 = vpack.c.bf16 %v244_v29, %v243_v28  ;;  %v792_v35 = vld [vmem:[%s1161_s3] sm:$0xff] }
  0x15   : > { %457 = vmatpush.bf16.msra.mxu1 %v797_v18  ;;  %806 = vmatpush.bf16.msra.mxu2 %v797_v18  ;;  %v820_v37 = vld [vmem:[%s1160_s2] ss:$0 sm:$0xff] }
  0x16   : > { %v821_v29 = vld [vmem:[%s1162_s4] ss:$0 sm:$0xff] }
  0x18   : > { %321 = vmatpush.bf16.msra.mxu0 %v788_v3  ;;  %803 = vmatpush.bf16.msra.mxu3 %v788_v3 }
  0x19   : > { %458 = vmatpush.bf16.msra.mxu1 %v796_v24  ;;  %807 = vmatpush.bf16.msra.mxu2 %v796_v24 }
  0x1b   : > { %746 = vmatmul.msk.bf16.vlgmr.msra.gmra.mxu0 %vm289_vm0, %v245_v6  ;;  %751 = vmatmul.msk.bf16.vlgmr.msra.gmra.mxu3 %vm289_vm0, %v250_v15 }
  0x1d   : > { %459 = vmatpush.bf16.msra.mxu1 %v795_v32  ;;  %808 = vmatpush.bf16.msra.mxu2 %v795_v32 }
  0x21   : > { %460 = vmatpush.bf16.msra.mxu1 %v794_v33  ;;  %809 = vmatpush.bf16.msra.mxu2 %v794_v33 }
  0x25   : > { %461 = vmatpush.bf16.msra.mxu1 %v793_v34  ;;  %810 = vmatpush.bf16.msra.mxu2 %v793_v34 }
  0x29   : > { %462 = vmatpush.bf16.msra.mxu1 %v792_v35  ;;  %811 = vmatpush.bf16.msra.mxu2 %v792_v35 }
  0x2b   : > { %747 = vmatmul.msk.bf16.gmra.mxu0 %vm289_vm0, %v246_v9  ;;  %752 = vmatmul.msk.bf16.gmra.mxu3 %vm289_vm0, %v251_v25 }
  0x3b   : > { %748 = vmatmul.msk.bf16.gmra.mxu0 %vm289_vm0, %v247_v12  ;;  %753 = vmatmul.msk.bf16.gmra.mxu3 %vm289_vm0, %v252_v31 }
  0x4b   : > { %749 = vmatmul.msk.bf16.gmra.mxu0 %vm289_vm0, %v248_v23 }
  0x5b   : > { %750 = vmatmul.msk.bf16.gmra.mxu0 %vm289_vm0, %v249_v30 }
  0x98   : > { %v323_v36 = vpop.f32.mrf.mxu0 }
  0x99   : > { %v324_v38 = vadd.f32 %v820_v37, %v323_v36 }
  0x9b   : > { %v363_v41 = vmax.f32 %v324_v38, 0.0 }
  0x9e   : > { %v348_v2 = vpop.f32.mrf.mxu3 }
  0x9f   : > { %v349_v11 = vadd.f32 %v820_v37, %v348_v2 }
  0xa0   : > { %v325_v39 = vpop.f32.mrf.mxu0 }
  0xa1   : > { %v326_v40 = vadd.f32 %v820_v37, %v325_v39  ;;  %v373_v13 = vmax.f32 %v349_v11, 0.0 }
  0xa3   : > { %v364_v42 = vmax.f32 %v326_v40, 0.0 }
  0xa5   : > { %v379_v43 = vpack.c.bf16 %v364_v42, %v363_v41 }
  0xa6   : > { %v350_v6 = vpop.f32.mrf.mxu3 }
  0xa7   : > { %463 = vmatmul.bf16.vlgmr.msra.gmra.mxu1 %v379_v43  ;;  %v351_v12 = vadd.f32 %v820_v37, %v350_v6 }
  0xa8   : > { %v328_v44 = vpop.f32.mrf.mxu0 }
  0xa9   : > { %v329_v45 = vadd.f32 %v820_v37, %v328_v44  ;;  %v374_v14 = vmax.f32 %v351_v12, 0.0 }
  0xab   : > { %v365_v48 = vmax.f32 %v329_v45, 0.0  ;;  %v384_v15 = vpack.c.bf16 %v374_v14, %v373_v13 }
  0xae   : > { %v353_v10 = vpop.f32.mrf.mxu3 }
  0xaf   : > { %v354_v17 = vadd.f32 %v820_v37, %v353_v10 }
  0xb0   : > { %v330_v46 = vpop.f32.mrf.mxu0 }
  0xb1   : > { %v331_v47 = vadd.f32 %v820_v37, %v330_v46  ;;  %v375_v20 = vmax.f32 %v354_v17, 0.0 }
  0xb3   : > { %v366_v49 = vmax.f32 %v331_v47, 0.0 }
  0xb5   : > { %v380_v50 = vpack.c.bf16 %v366_v49, %v365_v48 }
  0xb6   : > { %v355_v16 = vpop.f32.mrf.mxu3 }
  0xb7   : > { %468 = vmatmul.bf16.gmra.mxu1 %v380_v50  ;;  %v356_v18 = vadd.f32 %v820_v37, %v355_v16 }
  0xb8   : > { %v333_v51 = vpop.f32.mrf.mxu0 }
  0xb9   : > { %v334_v52 = vadd.f32 %v820_v37, %v333_v51  ;;  %v376_v21 = vmax.f32 %v356_v18, 0.0 }
  0xbb   : > { %v367_v55 = vmax.f32 %v334_v52, 0.0  ;;  %v385_v22 = vpack.c.bf16 %v376_v21, %v375_v20 }
  0xbe   : > { %v358_v19 = vpop.f32.mrf.mxu3 }
  0xbf   : > { %v359_v24 = vadd.f32 %v820_v37, %v358_v19 }
  0xc0   : > { %v335_v53 = vpop.f32.mrf.mxu0 }
  0xc1   : > { %v336_v54 = vadd.f32 %v820_v37, %v335_v53  ;;  %v377_v26 = vmax.f32 %v359_v24, 0.0 }
  0xc3   : > { %v368_v56 = vmax.f32 %v336_v54, 0.0 }
  0xc5   : > { %v381_v57 = vpack.c.bf16 %v368_v56, %v367_v55 }
  0xc6   : > { %v360_v23 = vpop.f32.mrf.mxu3 }
  0xc7   : > { %473 = vmatmul.bf16.gmra.mxu1 %v381_v57  ;;  %v361_v25 = vadd.f32 %v820_v37, %v360_v23 }
  0xc8   : > { %v338_v58 = vpop.f32.mrf.mxu0 }
  0xc9   : > { %v339_v59 = vadd.f32 %v820_v37, %v338_v58  ;;  %v378_v27 = vmax.f32 %v361_v25, 0.0 }
  0xcb   : > { %v369_v62 = vmax.f32 %v339_v59, 0.0  ;;  %v386_v28 = vpack.c.bf16 %v378_v27, %v377_v26 }
  0xd0   : > { %v340_v60 = vpop.f32.mrf.mxu0 }
  0xd1   : > { %v341_v61 = vadd.f32 %v820_v37, %v340_v60 }
  0xd3   : > { %v370_v63 = vmax.f32 %v341_v61, 0.0 }
  0xd5   : > { %v382_v0 = vpack.c.bf16 %v370_v63, %v369_v62 }
  0xd7   : > { %478 = vmatmul.bf16.gmra.mxu1 %v382_v0 }
  0xd8   : > { %v343_v1 = vpop.f32.mrf.mxu0 }
  0xd9   : > { %v344_v3 = vadd.f32 %v820_v37, %v343_v1 }
  0xdb   : > { %v371_v7 = vmax.f32 %v344_v3, 0.0 }
  0xe0   : > { %v345_v4 = vpop.f32.mrf.mxu0 }
  0xe1   : > { %v346_v5 = vadd.f32 %v820_v37, %v345_v4 }
  0xe3   : > { %v372_v8 = vmax.f32 %v346_v5, 0.0 }
  0xe5   : > { %v383_v9 = vpack.c.bf16 %v372_v8, %v371_v7 }
  0xe7   : > { %483 = vmatmul.bf16.vlgmr.msra.gmra.mxu2 %v383_v9 }
  0xf7   : > { %488 = vmatmul.bf16.gmra.mxu2 %v384_v15 }
 0x107   : > { %493 = vmatmul.bf16.gmra.mxu2 %v385_v22 }
 0x117   : > { %498 = vmatmul.bf16.gmra.mxu2 %v386_v28 }
 0x124   : > { %v464_v30 = vpop.f32.mrf.mxu1 }
 0x125   : > { %v465_v31 = vadd.f32 %v821_v29, %v464_v30 }
 0x127   : > { %504 = vmax.xlane.f32.xlu0 %v465_v31 }
 0x12c   : > { %v466_v32 = vpop.f32.mrf.mxu1 }
 0x12d   : > { %v467_v33 = vadd.f32 %v821_v29, %v466_v32 }
 0x12f   : > { %506 = vmax.xlane.f32.xlu0 %v467_v33 }
 0x134   : > { %v469_v34 = vpop.f32.mrf.mxu1 }
 0x135   : > { %v470_v35 = vadd.f32 %v821_v29, %v469_v34 }
 0x137   : > { %508 = vmax.xlane.f32.xlu1 %v470_v35 }
 0x13c   : > { %v471_v36 = vpop.f32.mrf.mxu1 }
 0x13d   : > { %v472_v38 = vadd.f32 %v821_v29, %v471_v36 }
 0x13f   : > { %510 = vmax.xlane.f32.xlu1 %v472_v38 }
 0x144   : > { %v474_v37 = vpop.f32.mrf.mxu1 }
 0x145   : > { %v475_v39 = vadd.f32 %v821_v29, %v474_v37 }
 0x147   : > { %512 = vmax.xlane.f32.xlu2 %v475_v39 }
 0x14c   : > { %v476_v40 = vpop.f32.mrf.mxu1 }
 0x14d   : > { %v1008_v41 = vadd.f32 %v821_v29, %v476_v40 }
 0x14f   : > { %514 = vmax.xlane.f32.xlu2 %v1008_v41 }
 0x154   : > { %v479_v42 = vpop.f32.mrf.mxu1 }
 0x155   : > { %v1011_v43 = vadd.f32 %v821_v29, %v479_v42 }
 0x157   : > { %516 = vmax.xlane.f32.xlu0 %v1011_v43 }
 0x15c   : > { %v481_v44 = vpop.f32.mrf.mxu1 }
 0x15d   : > { %v1014_v45 = vadd.f32 %v821_v29, %v481_v44 }
 0x15f   : > { %518 = vmax.xlane.f32.xlu1 %v1014_v45 }
 0x16a   : > { %v484_v46 = vpop.f32.mrf.mxu2 }
 0x16b   : > { %v1017_v47 = vadd.f32 %v821_v29, %v484_v46 }
 0x16d   : > { %520 = vmax.xlane.f32.xlu2 %v1017_v47 }
 0x172   : > { %v486_v48 = vpop.f32.mrf.mxu2 }
 0x173   : > { %v1020_v49 = vadd.f32 %v821_v29, %v486_v48 }
 0x175   : > { %522 = vmax.xlane.f32.xlu0 %v1020_v49 }
 0x17a   : > { %v489_v50 = vpop.f32.mrf.mxu2 }
 0x17b   : > { %v1023_v51 = vadd.f32 %v821_v29, %v489_v50 }
 0x17d   : > { %524 = vmax.xlane.f32.xlu1 %v1023_v51 }
 0x182   : > { %v491_v52 = vpop.f32.mrf.mxu2 }
 0x183   : > { %v1026_v53 = vadd.f32 %v821_v29, %v491_v52 }
 0x185   : > { %526 = vmax.xlane.f32.xlu2 %v1026_v53 }
 0x18a   : > { %v494_v54 = vpop.f32.mrf.mxu2 }
 0x18b   : > { %v1029_v55 = vadd.f32 %v821_v29, %v494_v54 }
 0x18d   : > { %528 = vmax.xlane.f32.xlu0 %v1029_v55 }
 0x192   : > { %v496_v56 = vpop.f32.mrf.mxu2 }
 0x193   : > { %v1032_v57 = vadd.f32 %v821_v29, %v496_v56 }
 0x195   : > { %530 = vmax.xlane.f32.xlu1 %v1032_v57 }
 0x19a   : > { %v499_v58 = vpop.f32.mrf.mxu2  ;;  %v505_v59 = vpop.xlane.xlu0 %504 }
 0x19b   : > { %v1035_v60 = vadd.f32 %v821_v29, %v499_v58  ;;  %v536_v61 = vsub.f32 %v465_v31, %v505_v59 }
 0x19d   : > { %v552_v62 = vmul.f32 1.442695, %v536_v61  ;;  %532 = vmax.xlane.f32.xlu2 %v1035_v60 }
 0x19f   : > { %822 = vpow2.f32 %v552_v62 }
 0x1a2   : > { %v501_v63 = vpop.f32.mrf.mxu2  ;;  %v507_v0 = vpop.xlane.xlu0 %506 }
 0x1a3   : > { %v1038_v1 = vadd.f32 %v821_v29, %v501_v63  ;;  %v537_v2 = vsub.f32 %v467_v33, %v507_v0 }
 0x1a5   : > { %v1040_v3 = vpop.eup %822  ;;  %v554_v4 = vmul.f32 1.442695, %v537_v2  ;;  %534 = vmax.xlane.f32.xlu0 %v1038_v1 }
 0x1a6   : > { %584 = vadd.xlane.f32.xlu1 %v1040_v3 }
 0x1a7   : > { %824 = vpow2.f32 %v554_v4 }
 0x1aa   : > { %v509_v5 = vpop.xlane.xlu1 %508 }
 0x1ab   : > { %v538_v6 = vsub.f32 %v470_v35, %v509_v5 }
 0x1ad   : > { %v1044_v7 = vpop.eup %824  ;;  %v556_v8 = vmul.f32 1.442695, %v538_v6 }
 0x1ae   : > { %586 = vadd.xlane.f32.xlu2 %v1044_v7 }
 0x1af   : > { %826 = vpow2.f32 %v556_v8 }
 0x1b2   : > { %v511_v9 = vpop.xlane.xlu1 %510 }
 0x1b3   : > { %v539_v10 = vsub.f32 %v472_v38, %v511_v9 }
 0x1b5   : > { %v1047_v11 = vpop.eup %826  ;;  %v558_v12 = vmul.f32 1.442695, %v539_v10 }
 0x1b6   : > { %588 = vadd.xlane.f32.xlu0 %v1047_v11 }
 0x1b7   : > { %828 = vpow2.f32 %v558_v12 }
 0x1ba   : > { %v513_v13 = vpop.xlane.xlu2 %512 }
 0x1bb   : > { %v540_v14 = vsub.f32 %v475_v39, %v513_v13 }
 0x1bd   : > { %v1050_v15 = vpop.eup %828  ;;  %v560_v16 = vmul.f32 1.442695, %v540_v14 }
 0x1be   : > { %590 = vadd.xlane.f32.xlu1 %v1050_v15 }
 0x1bf   : > { %830 = vpow2.f32 %v560_v16 }
 0x1c2   : > { %v515_v17 = vpop.xlane.xlu2 %514 }
 0x1c3   : > { %v541_v18 = vsub.f32 %v1008_v41, %v515_v17 }
 0x1c5   : > { %v1054_v19 = vpop.eup %830  ;;  %v562_v20 = vmul.f32 1.442695, %v541_v18 }
 0x1c6   : > { %592 = vadd.xlane.f32.xlu2 %v1054_v19 }
 0x1c7   : > { %832 = vpow2.f32 %v562_v20 }
 0x1ca   : > { %v517_v21 = vpop.xlane.xlu0 %516 }
 0x1cb   : > { %v542_v22 = vsub.f32 %v1011_v43, %v517_v21 }
 0x1cd   : > { %v1058_v23 = vpop.eup %832  ;;  %v564_v24 = vmul.f32 1.442695, %v542_v22 }
 0x1ce   : > { %594 = vadd.xlane.f32.xlu0 %v1058_v23 }
 0x1cf   : > { %834 = vpow2.f32 %v564_v24 }
 0x1d2   : > { %v519_v25 = vpop.xlane.xlu1 %518 }
 0x1d3   : > { %v543_v26 = vsub.f32 %v1014_v45, %v519_v25 }
 0x1d5   : > { %v1062_v27 = vpop.eup %834  ;;  %v566_v28 = vmul.f32 1.442695, %v543_v26 }
 0x1d6   : > { %596 = vadd.xlane.f32.xlu1 %v1062_v27 }
 0x1d7   : > { %836 = vpow2.f32 %v566_v28 }
 0x1dd   : > { %v1065_v29 = vpop.eup %836 }
 0x1de   : > { %598 = vadd.xlane.f32.xlu2 %v1065_v29 }
 0x1e0   : > { %v521_v30 = vpop.xlane.xlu2 %520 }
 0x1e1   : > { %v544_v31 = vsub.f32 %v1017_v47, %v521_v30 }
 0x1e3   : > { %v568_v32 = vmul.f32 1.442695, %v544_v31 }
 0x1e5   : > { %838 = vpow2.f32 %v568_v32 }
 0x1e8   : > { %v523_v33 = vpop.xlane.xlu0 %522 }
 0x1e9   : > { %v545_v34 = vsub.f32 %v1020_v49, %v523_v33 }
 0x1eb   : > { %v1070_v35 = vpop.eup %838  ;;  %v570_v36 = vmul.f32 1.442695, %v545_v34 }
 0x1ec   : > { %600 = vadd.xlane.f32.xlu0 %v1070_v35 }
 0x1ed   : > { %840 = vpow2.f32 %v570_v36 }
 0x1f0   : > { %v525_v38 = vpop.xlane.xlu1 %524 }
 0x1f1   : > { %v546_v37 = vsub.f32 %v1023_v51, %v525_v38 }
 0x1f3   : > { %v1074_v39 = vpop.eup %840  ;;  %v572_v40 = vmul.f32 1.442695, %v546_v37 }
 0x1f4   : > { %602 = vadd.xlane.f32.xlu1 %v1074_v39 }
 0x1f5   : > { %842 = vpow2.f32 %v572_v40 }
 0x1f8   : > { %v527_v41 = vpop.xlane.xlu2 %526 }
 0x1f9   : > { %v547_v42 = vsub.f32 %v1026_v53, %v527_v41 }
 0x1fb   : > { %v1078_v43 = vpop.eup %842  ;;  %v574_v44 = vmul.f32 1.442695, %v547_v42 }
 0x1fc   : > { %604 = vadd.xlane.f32.xlu2 %v1078_v43 }
 0x1fd   : > { %844 = vpow2.f32 %v574_v44 }
 0x200   : > { %v529_v45 = vpop.xlane.xlu0 %528 }
 0x201   : > { %v548_v46 = vsub.f32 %v1029_v55, %v529_v45 }
 0x203   : > { %v1082_v47 = vpop.eup %844  ;;  %v576_v48 = vmul.f32 1.442695, %v548_v46 }
 0x204   : > { %606 = vadd.xlane.f32.xlu0 %v1082_v47 }
 0x205   : > { %846 = vpow2.f32 %v576_v48 }
 0x208   : > { %v531_v49 = vpop.xlane.xlu1 %530 }
 0x209   : > { %v549_v50 = vsub.f32 %v1032_v57, %v531_v49 }
 0x20b   : > { %v1086_v51 = vpop.eup %846  ;;  %v578_v52 = vmul.f32 1.442695, %v549_v50 }
 0x20c   : > { %608 = vadd.xlane.f32.xlu1 %v1086_v51 }
 0x20d   : > { %848 = vpow2.f32 %v578_v52 }
 0x210   : > { %v533_v53 = vpop.xlane.xlu2 %532 }
 0x211   : > { %v550_v54 = vsub.f32 %v1035_v60, %v533_v53 }
 0x213   : > { %v1090_v55 = vpop.eup %848  ;;  %v580_v56 = vmul.f32 1.442695, %v550_v54 }
 0x214   : > { %610 = vadd.xlane.f32.xlu2 %v1090_v55 }
 0x215   : > { %850 = vpow2.f32 %v580_v56 }
 0x218   : > { %v535_v58 = vpop.xlane.xlu0 %534 }
 0x219   : > { %v551_v59 = vsub.f32 %v1038_v1, %v535_v58  ;;  %v585_v57 = vpop.xlane.xlu1 %584 }
 0x21a   : > { %852 = vrcp.f32 %v585_v57 }
 0x21b   : > { %v1094_v61 = vpop.eup %850  ;;  %v582_v62 = vmul.f32 1.442695, %v551_v59 }
 0x21c   : > { %612 = vadd.xlane.f32.xlu0 %v1094_v61 }
 0x21d   : > { %854 = vpow2.f32 %v582_v62 }
 0x220   : > { %v853_v63 = vpop.eup %852 }
 0x221   : > { %v632_v60 = vmul.f32 %v853_v63, %v1040_v3  ;;  %v587_v0 = vpop.xlane.xlu2 %586 }
 0x222   : > { %856 = vrcp.f32 %v587_v0 }
 0x223   : > { %v1105_v1 = vpop.eup %854  ;;  %649 = vst.msk [vmem:[%s1102_s8] sm:$0xff] %vm648_vm1, %v632_v60 }
 0x224   : > { %614 = vadd.xlane.f32.xlu1 %v1105_v1 }
 0x228   : > { %v857_v2 = vpop.eup %856 }
 0x229   : > { %v633_v4 = vmul.f32 %v857_v2, %v1044_v7  ;;  %v589_v5 = vpop.xlane.xlu0 %588 }
 0x22a   : > { %858 = vrcp.f32 %v589_v5 }
 0x22b   : > { %650 = vst.msk [vmem:[%s1102_s8 + $0x8] sm:$0xff] %vm648_vm1, %v633_v4 }
 0x230   : > { %v859_v6 = vpop.eup %858 }
 0x231   : > { %v634_v3 = vmul.f32 %v859_v6, %v1047_v11  ;;  %v591_v8 = vpop.xlane.xlu1 %590 }
 0x232   : > { %860 = vrcp.f32 %v591_v8 }
 0x233   : > { %651 = vst.msk [vmem:[%s1102_s8 + $0x10] sm:$0xff] %vm648_vm1, %v634_v3 }
 0x238   : > { %v861_v9 = vpop.eup %860 }
 0x239   : > { %v635_v10 = vmul.f32 %v861_v9, %v1050_v15  ;;  %v593_v12 = vpop.xlane.xlu2 %592 }
 0x23a   : > { %862 = vrcp.f32 %v593_v12 }
 0x23b   : > { %652 = vst.msk [vmem:[%s1102_s8 + $0x18] sm:$0xff] %vm648_vm1, %v635_v10 }
 0x240   : > { %v863_v7 = vpop.eup %862 }
 0x241   : > { %v636_v13 = vmul.f32 %v863_v7, %v1054_v19  ;;  %v595_v14 = vpop.xlane.xlu0 %594 }
 0x242   : > { %864 = vrcp.f32 %v595_v14 }
 0x243   : > { %653 = vst.msk [vmem:[%s1102_s8 + $0x20] sm:$0xff] %vm648_vm1, %v636_v13 }
 0x248   : > { %v865_v11 = vpop.eup %864 }
 0x249   : > { %v637_v16 = vmul.f32 %v865_v11, %v1058_v23  ;;  %v597_v17 = vpop.xlane.xlu1 %596 }
 0x24a   : > { %866 = vrcp.f32 %v597_v17 }
 0x24b   : > { %654 = vst.msk [vmem:[%s1102_s8 + $0x28] sm:$0xff] %vm648_vm1, %v637_v16 }
 0x250   : > { %v867_v15 = vpop.eup %866 }
 0x251   : > { %v638_v18 = vmul.f32 %v867_v15, %v1062_v27  ;;  %v599_v20 = vpop.xlane.xlu2 %598 }
 0x252   : > { %868 = vrcp.f32 %v599_v20 }
 0x253   : > { %655 = vst.msk [vmem:[%s1102_s8 + $0x30] sm:$0xff] %vm648_vm1, %v638_v18 }
 0x258   : > { %v869_v19 = vpop.eup %868 }
 0x259   : > { %v639_v21 = vmul.f32 %v869_v19, %v1065_v29 }
 0x25b   : > { %656 = vst.msk [vmem:[%s1102_s8 + $0x38] sm:$0xff] %vm648_vm1, %v639_v21 }
 0x25f   : > { %v601_v22 = vpop.xlane.xlu0 %600 }
 0x260   : > { %870 = vrcp.f32 %v601_v22 }
 0x266   : > { %v871_v23 = vpop.eup %870 }
 0x267   : > { %v640_v24 = vmul.f32 %v871_v23, %v1070_v35  ;;  %v603_v25 = vpop.xlane.xlu1 %602 }
 0x268   : > { %872 = vrcp.f32 %v603_v25 }
 0x269   : > { %657 = vst.msk [vmem:[%s1102_s8 + $0x40] sm:$0xff] %vm648_vm1, %v640_v24 }
 0x26e   : > { %v873_v26 = vpop.eup %872 }
 0x26f   : > { %v641_v27 = vmul.f32 %v873_v26, %v1074_v39  ;;  %v605_v28 = vpop.xlane.xlu2 %604 }
 0x270   : > { %874 = vrcp.f32 %v605_v28 }
 0x271   : > { %658 = vst.msk [vmem:[%s1102_s8 + $0x48] sm:$0xff] %vm648_vm1, %v641_v27 }
 0x276   : > { %v875_v29 = vpop.eup %874 }
 0x277   : > { %v642_v30 = vmul.f32 %v875_v29, %v1078_v43  ;;  %v607_v31 = vpop.xlane.xlu0 %606 }
 0x278   : > { %876 = vrcp.f32 %v607_v31 }
 0x279   : > { %659 = vst.msk [vmem:[%s1102_s8 + $0x50] sm:$0xff] %vm648_vm1, %v642_v30 }
 0x27e   : > { %v877_v32 = vpop.eup %876 }
 0x27f   : > { %v643_v33 = vmul.f32 %v877_v32, %v1082_v47  ;;  %v609_v34 = vpop.xlane.xlu1 %608 }
 0x280   : > { %878 = vrcp.f32 %v609_v34 }
 0x281   : > { %660 = vst.msk [vmem:[%s1102_s8 + $0x58] sm:$0xff] %vm648_vm1, %v643_v33 }
 0x286   : > { %v879_v35 = vpop.eup %878 }
 0x287   : > { %v644_v36 = vmul.f32 %v879_v35, %v1086_v51  ;;  %v611_v38 = vpop.xlane.xlu2 %610 }
 0x288   : > { %880 = vrcp.f32 %v611_v38 }
 0x289   : > { %661 = vst.msk [vmem:[%s1102_s8 + $0x60] sm:$0xff] %vm648_vm1, %v644_v36 }
 0x28e   : > { %v881_v37 = vpop.eup %880 }
 0x28f   : > { %v645_v39 = vmul.f32 %v881_v37, %v1090_v55  ;;  %v613_v40 = vpop.xlane.xlu0 %612 }
 0x290   : > { %882 = vrcp.f32 %v613_v40 }
 0x291   : > { %662 = vst.msk [vmem:[%s1102_s8 + $0x68] sm:$0xff] %vm648_vm1, %v645_v39 }
 0x296   : > { %v883_v41 = vpop.eup %882 }
 0x297   : > { %v646_v42 = vmul.f32 %v883_v41, %v1094_v61  ;;  %v615_v43 = vpop.xlane.xlu1 %614 }
 0x298   : > { %884 = vrcp.f32 %v615_v43 }
 0x299   : > { %663 = vst.msk [vmem:[%s1102_s8 + $0x70] sm:$0xff] %vm648_vm1, %v646_v42 }
 0x29e   : > { %v885_v44 = vpop.eup %884 }
 0x29f   : > { %v647_v45 = vmul.f32 %v885_v44, %v1105_v1 }
 0x2a1   : > { %664 = vst.msk [vmem:[%s1102_s8 + $0x78] sm:$0xff] %vm648_vm1, %v647_v45 }
 0x2a2 PF: > { %s15_s18 = sadd.s32 1, %s892_s18  }
 0x2a3   : > { %p12_p4 = scmp.ge.s32.totalorder %s15_s18, 4  }
 0x2a5   :  { %14 = sbr.rel (!%p12_p4) target bundleno = 1 (0x1), region = 70 }

</bundles_post_ra>
